<compile_context>
chip_gen: v5e
topology: v5e:2x2
jax: 0.10.0
libtpu: 0.0.40
codegen_flags: <defaults>
</compile_context>

<pallas_src>
import functools
import math

import jax
import jax.numpy as jnp
from jax.experimental import pallas as pl
from jax.experimental.pallas import tpu as pltpu


def film1d_kernel(gb_ref, x_ref, o_ref, *, n_chunks, chunk):
    """One grid step == one (bc-block, T*F lane-tile) block.

    gb_ref : [2, bcT, chunk]   gamma (row 0) / beta (row 1) pattern of period F;
                               constant along the t grid axis (fetched once per i)
    x_ref  : [bcT, n_chunks*chunk]
    o_ref  : [bcT, n_chunks*chunk]
    """
    g = gb_ref[0]
    b = gb_ref[1]
    # Static, 128-lane-aligned slices; n_chunks <= 8 keeps the unroll small.
    for j in range(n_chunks):
        sl = slice(j * chunk, (j + 1) * chunk)
        o_ref[:, sl] = (x_ref[:, sl] * g + b).astype(o_ref.dtype)


def _choose_tiles(BC, L, F, itemsize, target_bytes, max_unroll=8):
    """Tiling for x viewed as [BC, L] with L = T*F (lane-dense collapsed layout).

    Returns (bc_tile, n_chunks, chunk):
      chunk    lane width of the pre-tiled gamma/beta pattern: a multiple of F
               (exact repeat) and of 128 lanes (aligned, dense stores), kept
               small so gamma/beta HBM + VMEM cost is negligible.
      n_chunks static in-kernel unroll; lane tile = n_chunks * chunk.
      bc_tile  rows per block: dtype-correct sublane multiple or the full B*C.
    """
    target_bytes = max(256 << 10, min(int(target_bytes), 8 << 20))
    sub = {2: 16, 1: 32}.get(itemsize, 8)        # sublane multiple per dtype
    target_elems = max(1, target_bytes // itemsize)

    unit = (F * 128) // math.gcd(F, 128)         # lcm(F, 128)
    if unit >= L:
        chunk = L                                 # whole row; block dim == array dim
    else:
        cap = max(1024, min(L // 32, 8192))       # soft cap on pattern width
        chunk = unit * max(1, min(L // unit, cap // unit))

    # Fill the ~target-size block with B*C rows first (no extra gamma traffic) ...
    bc_tile = min(BC, max(sub, target_elems // chunk))
    if bc_tile < BC:
        bc_tile = max(sub, (bc_tile // sub) * sub)

    # ... then widen the lane tile via the small static in-kernel loop.
    n_chunks = max(1, min(max_unroll, L // chunk,
                          target_elems // (bc_tile * chunk)))
    return bc_tile, n_chunks, chunk


def film1d_forward(x, y, wg, bg, wb, bb, channels_dim, feature_size,
                   target_block_bytes=2 << 20):
    """x: [B, C, T, F]; y: [B, input_dim]; wg/wb: [C*F, input_dim]; bg/bb: [C*F]."""
    B, C, T, F = x.shape
    assert C == channels_dim and F == feature_size
    BC, L = B * C, T * F

    # Hoisted Conv1d(k=1): a [B, input_dim] x [input_dim, C*F] matmul -> tiny,
    # left to XLA.  Modulation params kept in f32 (slightly more accurate than
    # the param dtype; tolerance-level difference for bf16 inputs).
    f32 = jnp.float32
    g = y.astype(f32) @ wg.T.astype(f32) + bg.astype(f32)      # [B, C*F]
    be = y.astype(f32) @ wb.T.astype(f32) + bb.astype(f32)

    bc_tile, n_chunks, chunk = _choose_tiles(BC, L, F, x.dtype.itemsize,
                                             target_block_bytes)
    t_lane = n_chunks * chunk

    # gamma/beta repeat with period F along the collapsed T*F axis: pre-tile one
    # chunk's worth and stack gamma+beta so a single DMA per bc-block covers both.
    reps = chunk // F
    gb = jnp.stack([jnp.tile(g.reshape(BC, F), (1, reps)),
                    jnp.tile(be.reshape(BC, F), (1, reps))])   # [2, BC, chunk] f32

    x2 = x.reshape(BC, L)                          # free, contiguous, lane-dense

    # t axis innermost so the gamma/beta block (index constant in t) stays
    # resident and is DMA'd only once per bc-block.
    grid = (pl.cdiv(BC, bc_tile), pl.cdiv(L, t_lane))

    block_bytes = bc_tile * t_lane * x.dtype.itemsize
    gb_block_bytes = 2 * bc_tile * chunk * 4
    # 2x(in + out) double-buffered x/out blocks + 2x gb block + headroom,
    # capped at 48 MiB (safe on v7x's 64 MiB physical VMEM).
    vmem_needed = 4 * block_bytes + 2 * gb_block_bytes + (1 << 20)
    vmem_limit = int(min(48 << 20, max(16 << 20, vmem_needed)))

    kernel = functools.partial(film1d_kernel, n_chunks=n_chunks, chunk=chunk)

    out2 = pl.pallas_call(
        kernel,
        out_shape=jax.ShapeDtypeStruct((BC, L), x.dtype),
        grid=grid,
        in_specs=[
            pl.BlockSpec((2, bc_tile, chunk), lambda i, t: (0, i, 0)),  # gamma/beta
            pl.BlockSpec((bc_tile, t_lane), lambda i, t: (i, t)),       # x tile
        ],
        out_specs=pl.BlockSpec((bc_tile, t_lane), lambda i, t: (i, t)),
        compiler_params=pltpu.CompilerParams(
            dimension_semantics=("parallel", "parallel"),
            vmem_limit_bytes=vmem_limit,
        ),
    )(gb, x2)

    return out2.reshape(B, C, T, F)


def film1d_reference(x, y, wg, bg, wb, bb, channels_dim, feature_size):
    """Plain-JAX reference mirroring the PyTorch forward."""
    B = y.shape[0]
    g = y @ wg.T + bg            # [B, C*F]
    be = y @ wb.T + bb
    g = g.reshape(B, channels_dim, feature_size, 1).transpose(0, 1, 3, 2)   # [B,C,1,F]
    be = be.reshape(B, channels_dim, feature_size, 1).transpose(0, 1, 3, 2)
    return x * g + be


if __name__ == "__main__":
    # Small shapes consistent with the module's forward.
    B = 2
    input_dim = 8
    channels_dim = 4
    T = 16
    feature_size = 32
    CF = channels_dim * feature_size

    key = jax.random.PRNGKey(0)
    kx, ky, kwg, kbg, kwb, kbb = jax.random.split(key, 6)

    x = jax.random.normal(kx, (B, channels_dim, T, feature_size), dtype=jnp.float32)
    y = jax.random.normal(ky, (B, input_dim), dtype=jnp.float32)

    # Conv1d(k=1) weights: [out=C*F, in=input_dim].
    wg = jax.random.normal(kwg, (CF, input_dim), dtype=jnp.float32) * 0.1
    bg = jax.random.normal(kbg, (CF,), dtype=jnp.float32) * 0.1
    wb = jax.random.normal(kwb, (CF, input_dim), dtype=jnp.float32) * 0.1
    bb = jax.random.normal(kbb, (CF,), dtype=jnp.float32) * 0.1

    out = film1d_forward(x, y, wg, bg, wb, bb, channels_dim, feature_size)
    out = jax.block_until_ready(out)

    ref = film1d_reference(x, y, wg, bg, wb, bb, channels_dim, feature_size)
    assert out.shape == (B, channels_dim, T, feature_size)
    assert jnp.allclose(out, ref, atol=1e-5, rtol=1e-5), "mismatch vs reference"

    print("KERNEL_OK")
</pallas_src>

<mosaic_0001>
module attributes {stable_mosaic.version = 11 : i64} {
  func.func @film1d_kernel(%arg0: i32, %arg1: i32, %arg2: memref<2x8x512xf32, #tpu.memory_space<vmem>>, %arg3: memref<8x512xf32, #tpu.memory_space<vmem>>, %arg4: memref<8x512xf32, #tpu.memory_space<vmem>>) attributes {dimension_semantics = [#tpu.dimension_semantics<parallel>, #tpu.dimension_semantics<parallel>], iteration_bounds = array<i64: 1, 1>, scalar_prefetch = 0 : i64, scratch_operands = 0 : i64, tpu.core_type = #tpu.core_type<tc>, window_params = [{transform_indices = @transform_0, window_bounds = array<i64: 2, 8, 512>}, {transform_indices = @transform_1, window_bounds = array<i64: 8, 512>}, {transform_indices = @transform_2, window_bounds = array<i64: 8, 512>}]} {
    %c0 = arith.constant 0 : index
    %c0_0 = arith.constant 0 : index
    %c0_1 = arith.constant 0 : index
    %0 = vector.load %arg2[%c0, %c0_0, %c0_1] : memref<2x8x512xf32, #tpu.memory_space<vmem>>, vector<1x8x512xf32>
    %1 = vector.shape_cast %0 : vector<1x8x512xf32> to vector<8x512xf32>
    %c1 = arith.constant 1 : index
    %c0_2 = arith.constant 0 : index
    %c0_3 = arith.constant 0 : index
    %2 = vector.load %arg2[%c1, %c0_2, %c0_3] : memref<2x8x512xf32, #tpu.memory_space<vmem>>, vector<1x8x512xf32>
    %3 = vector.shape_cast %2 : vector<1x8x512xf32> to vector<8x512xf32>
    %c0_4 = arith.constant 0 : index
    %c0_5 = arith.constant 0 : index
    %4 = vector.load %arg3[%c0_4, %c0_5] : memref<8x512xf32, #tpu.memory_space<vmem>>, vector<8x512xf32>
    %5 = arith.mulf %4, %1 : vector<8x512xf32>
    %6 = arith.addf %5, %3 : vector<8x512xf32>
    %c0_6 = arith.constant 0 : index
    %c0_7 = arith.constant 0 : index
    %7 = vector.load %arg4[%c0_6, %c0_7] : memref<8x512xf32, #tpu.memory_space<vmem>>, vector<8x512xf32>
    tpu.vector_store %arg4[%c0_6, %c0_7], %6 {strides = array<i32>} : memref<8x512xf32, #tpu.memory_space<vmem>>, vector<8x512xf32>,
    return
  }
  func.func @transform_0(%arg0: i32, %arg1: i32) -> (i32, i32, i32) {
    %c0_i32 = arith.constant 0 : i32
    %c0_i32_0 = arith.constant 0 : i32
    %c0_i32_1 = arith.constant 0 : i32
    return %c0_i32, %arg0, %c0_i32_0 : i32, i32, i32
  }
  func.func @transform_1(%arg0: i32, %arg1: i32) -> (i32, i32) {
    %c0_i32 = arith.constant 0 : i32
    return %arg0, %arg1 : i32, i32
  }
  func.func @transform_2(%arg0: i32, %arg1: i32) -> (i32, i32) {
    %c0_i32 = arith.constant 0 : i32
    return %arg0, %arg1 : i32, i32
  }
}

</mosaic_0001>

<bundles_post_ra>
// kernel: tpu_custom_call.1
= control target key start
LH: loop header
LB: loop body
LE: loop exit
PB: predicated region body
PF: predicated region fallthrough
CT: control target
= control target key end

     0   :  { %7 = vsyncpa [#allocation3], 0  ;;  %s197_s0 = inlined_call_operand.hbm [shape: f32[2,8,512], index: 0, kind: input, shape index: {}]   ;;  %s198_s1 = inlined_call_operand.hbm [shape: f32[8,512], index: 1, kind: input, shape index: {}]   ;;  %s199_s2 = inlined_call_operand.hbm [shape: f32[8,512], index: 2, kind: output, shape index: {}]  }
   0x1   :  { %8 = vsyncpa [#allocation6], 0 }
   0x2   :  { %9 = vsyncpa [#allocation4], 0  ;;  %s14_s11 = sshll.u32 %s197_s0, 4  ;;  %s168_s12 = smov [#allocation2]   ;;  %s15_s11 = int_to_ptr.hbm [resolvable:$true] %s14_s11 }
   0x3   :  { %s16_s13 = sshll.u32 %s168_s12, 4  ;;  %s28_s16 = sshll.u32 %s198_s1, 4  ;;  %s17_s13 = int_to_ptr.vmem [resolvable:$true] %s16_s13  ;;  %s29_s16 = int_to_ptr.hbm [resolvable:$true] %s28_s16 }
   0x4   :  { %s169_s17 = smov 512   ;;  %s170_s18 = smov 32  }
   0x5   :  { %22 = dma.hbm_to_vmem [thread:$0]  %s15_s11, 1024, %s17_s13, [#allocation3], %s169_s17, %s169_s17, %s170_s18  }
   0x6   :  { %s171_s19 = smov [#allocation5]  }
   0x7   :  { %s30_s20 = sshll.u32 %s171_s19, 4  ;;  %s31_s20 = int_to_ptr.vmem [resolvable:$true] %s30_s20 }
   0x8   :  { %33 = dma.hbm_to_vmem [thread:$0]  %s29_s16, 512, %s31_s20, [#allocation6]  }
   0x9   :  { %162 = dma.done.wait [#allocation3], 1024  }
   0xa   :  { %163 = vsyncadd [#allocation3], 4294966272 }
   0xb   :  { %164 = dma.done.wait [#allocation6], 512  }
   0xc   :  { %165 = vsyncadd [#allocation6], 4294966784  ;;  %v42_v0 = vld [vmem:[#allocation2] sm:$0xff]  ;;  %v43_v4 = vld [vmem:[#allocation2 + $0x8] sm:$0xff]  ;;  %s172_s0 = smov [#allocation7]   ;;  %s74_s23 = sshll.u32 %s199_s2, 4  ;;  %s75_s23 = int_to_ptr.hbm [resolvable:$true] %s74_s23 }
   0xd   :  { %v47_v1 = vld [vmem:[#allocation2 + $0x20] sm:$0xff]  ;;  %v48_v5 = vld [vmem:[#allocation2 + $0x28] sm:$0xff]  ;;  %v44_v8 = vld [vmem:[#allocation2 + $0x10] sm:$0xff]  ;;  %s72_s1 = sshll.u32 %s172_s0, 4  ;;  %s73_s1 = int_to_ptr.vmem [resolvable:$true] %s72_s1 }
   0xe   :  { %v51_v2 = vld [vmem:[#allocation5] sm:$0xff]  ;;  %v52_v6 = vld [vmem:[#allocation5 + $0x8] sm:$0xff]  ;;  %v49_v9 = vld [vmem:[#allocation2 + $0x30] sm:$0xff] }
   0xf   :  { %v55_v3 = vmul.f32 %v51_v2, %v42_v0  ;;  %v56_v7 = vmul.f32 %v52_v6, %v43_v4  ;;  %v53_v10 = vld [vmem:[#allocation5 + $0x10] sm:$0xff]  ;;  %v45_v13 = vld [vmem:[#allocation2 + $0x18] sm:$0xff] }
  0x10   :  { %v57_v12 = vmul.f32 %v53_v10, %v44_v8  ;;  %v50_v14 = vld [vmem:[#allocation2 + $0x38] sm:$0xff] }
  0x11   :  { %v59_v11 = vadd.f32 %v55_v3, %v47_v1  ;;  %v54_v15 = vld [vmem:[#allocation5 + $0x18] sm:$0xff]  ;;  %v60_v16 = vadd.f32 %v56_v7, %v48_v5 }
  0x12   :  { %v58_v17 = vmul.f32 %v54_v15, %v45_v13  ;;  %v61_v18 = vadd.f32 %v57_v12, %v49_v9 }
  0x13   :  { %63 = vst [vmem:[#allocation7] sm:$0xff] %v59_v11 }
  0x14   :  { %64 = vst [vmem:[#allocation7 + $0x8] sm:$0xff] %v60_v16  ;;  %v62_v19 = vadd.f32 %v58_v17, %v50_v14 }
  0x15   :  { %65 = vst [vmem:[#allocation7 + $0x10] sm:$0xff] %v61_v18 }
  0x16   :  { %66 = vst [vmem:[#allocation7 + $0x18] sm:$0xff] %v62_v19 }
  0x17   :  { %77 = dma.vmem_to_hbm [thread:$0]  %s73_s1, 512, %s75_s23, [#allocation4]  }
  0x18   :  { %166 = dma.done.wait [#allocation4], 512  }
  0x19   :  { %167 = vsyncadd [#allocation4], 4294966784 }
  0x1a   :  { %82 = vsyncpa [#allocation3], 1 }
  0x1b   :  { %83 = vsyncpa [#allocation6], 1 }
  0x1c   :  { %84 = vsyncpa [#allocation4], 1 }

</bundles_post_ra>
